<compile_context>
chip_gen: v5e
topology: v5e:2x2
jax: 0.10.0
libtpu: 0.0.40
codegen_flags: <defaults>
</compile_context>

<pallas_src>
import functools

import jax
import jax.numpy as jnp
from jax.experimental import pallas as pl
from jax.experimental.pallas import tpu as pltpu


USE_BF16_MATMUL = True   # bf16 MXU inputs, f32 accumulation.  False = exact f32.

_LANE = 128    # vreg lane width: last dim of every block padded to a multiple
_SUBLANE = 8   # vreg sublane count: batch padded to a multiple


def _round_up(n, m):
    return ((n + m - 1) // m) * m


def _mlp_fused_kernel(*refs, n_layers: int):
    """refs = (x_ref, w0_ref, b0_ref, ..., w{L-1}_ref, b{L-1}_ref, o_ref).

    Static Python loop over layers; activations never leave vregs/VMEM.
    Matmuls accumulate in f32 on the MXU; bias-add + ReLU run on the VPU in
    f32; the activation is cast back to the weight dtype (bf16 when enabled)
    once per layer, right after the ReLU.
    """
    x_ref = refs[0]
    o_ref = refs[1 + 2 * n_layers]

    x = x_ref[...]                                    # (tm, D0_pad), compute dtype
    for i in range(n_layers):
        w = refs[1 + 2 * i][...]                      # (K_pad, N_pad), compute dtype
        b = refs[2 + 2 * i][...]                      # (1,  N_pad), f32
        y = jnp.dot(x, w, preferred_element_type=jnp.float32)   # MXU, f32 acc
        y = y + b                                     # f32 epilogue (VPU)
        if i < n_layers - 1:
            y = jnp.maximum(y, 0.0)
            x = y.astype(w.dtype)                     # carry activation in bf16/f32
        else:
            x = y
    o_ref[...] = x.astype(o_ref.dtype)


def prepare_params(params, use_bf16=USE_BF16_MATMUL):
    """Pad + cast weights/biases ONCE.  Call this outside the hot loop.

    params: list of (w_i, b_i), w_i: (D_i, D_{i+1}) f32, b_i: (D_{i+1},) f32
    returns list of (w_pad, b_pad) with lane-dense shapes; w in compute dtype,
    b kept in f32 (it is added to the f32 accumulator).
    """
    cdt = jnp.bfloat16 if use_bf16 else jnp.float32
    padded = []
    for (w, b) in params:
        K, N = w.shape
        Kp, Np = _round_up(K, _LANE), _round_up(N, _LANE)
        wp = jnp.zeros((Kp, Np), cdt).at[:K, :N].set(w.astype(cdt))
        bp = jnp.zeros((1, Np), jnp.float32).at[0, :N].set(b.astype(jnp.float32))
        padded.append((wp, bp))
    return padded


def _choose_batch_tile(B):
    """Batch tile: <=256 rows, and >=2 grid steps whenever the batch allows
    (dimension_semantics=("parallel",) only shards across v7x's 2 TCs if the
    grid has >=2 steps)."""
    b_pad = _round_up(B, _SUBLANE)
    if b_pad <= _SUBLANE:
        return b_pad
    return min(256, _round_up(pl.cdiv(b_pad, 2), _SUBLANE))


@functools.partial(jax.jit, static_argnames=("out_features",))
def flexible_relu_network(x, padded_params, *, out_features):
    """Fused forward: Linear -> ReLU -> ... -> Linear (no final ReLU).

    x:             (B, D0) float32
    padded_params: output of prepare_params (pre-padded, pre-cast, reused)
    out_features:  true (unpadded) width of the last layer (static)
    returns (B, out_features) float32
    """
    B, D0 = x.shape
    n_layers = len(padded_params)
    cdt = padded_params[0][0].dtype                       # bf16 or f32
    dims_p = [padded_params[0][0].shape[0]] + [w.shape[1] for (w, _) in padded_params]

    # Batch tiling: one "parallel" grid axis.
    tm = _choose_batch_tile(B)
    Bp = _round_up(B, tm)
    grid = (Bp // tm,)

    # Only the activation input is padded per call (it changes every call);
    # weights/biases were padded once in prepare_params.
    if (Bp, dims_p[0]) != (B, D0) or x.dtype != cdt:
        xp = jnp.zeros((Bp, dims_p[0]), cdt).at[:B, :D0].set(x.astype(cdt))
    else:
        xp = x

    args = [xp]
    in_specs = [pl.BlockSpec((tm, dims_p[0]), lambda i: (i, 0))]
    for li, (wp, bp) in enumerate(padded_params):
        Kp, Np = dims_p[li], dims_p[li + 1]
        args += [wp, bp]
        # Grid-invariant blocks: fetched exactly once -> single-buffer them.
        in_specs += [
            pl.BlockSpec((Kp, Np), lambda i: (0, 0), pipeline_mode=pl.Buffered(1)),
            pl.BlockSpec((1, Np), lambda i: (0, 0), pipeline_mode=pl.Buffered(1)),
        ]

    out_specs = pl.BlockSpec((tm, dims_p[-1]), lambda i: (i, 0))
    out_shape = jax.ShapeDtypeStruct((Bp, dims_p[-1]), jnp.float32)

    # Real VMEM footprint: single-buffered weights/biases + double-buffered
    # x/out tiles + f32 activation headroom.
    w_itemsize = jnp.dtype(cdt).itemsize
    weight_bytes = sum(w.size * w_itemsize + b.size * 4 for (w, b) in padded_params)
    io_bytes = 2 * tm * (dims_p[0] * w_itemsize + dims_p[-1] * 4)
    act_bytes = 4 * tm * max(dims_p) * 4
    vmem_limit = int(min(64 << 20, max(32 << 20, weight_bytes + io_bytes + act_bytes)))

    flops = 2 * Bp * sum(dims_p[i] * dims_p[i + 1] for i in range(n_layers))
    bytes_accessed = xp.size * w_itemsize + weight_bytes + Bp * dims_p[-1] * 4

    out_p = pl.pallas_call(
        functools.partial(_mlp_fused_kernel, n_layers=n_layers),
        out_shape=out_shape,
        grid_spec=pl.GridSpec(grid=grid, in_specs=in_specs, out_specs=out_specs),
        compiler_params=pltpu.CompilerParams(
            dimension_semantics=("parallel",),
            vmem_limit_bytes=vmem_limit),
        cost_estimate=pl.CostEstimate(flops=flops, transcendentals=0,
                                      bytes_accessed=bytes_accessed),
    )(*args)

    # Consumers that tolerate a lane-padded slab can skip this slice.
    return out_p[:B, :out_features]


def init_params(layer_sizes, key):
    """Deterministic init mirroring nn.Linear's U(-1/sqrt(fan_in), 1/sqrt(fan_in))."""
    params = []
    for i in range(len(layer_sizes) - 1):
        fan_in, fan_out = layer_sizes[i], layer_sizes[i + 1]
        key, kw, kb = jax.random.split(key, 3)
        bound = 1.0 / jnp.sqrt(jnp.float32(fan_in))
        # Stored as (in, out) = PyTorch weight (out, in) transposed.
        w = jax.random.uniform(kw, (fan_in, fan_out), jnp.float32, -bound, bound)
        b = jax.random.uniform(kb, (fan_out,), jnp.float32, -bound, bound)
        params.append((w, b))
    return params


def reference_forward(x, params):
    n_layers = len(params)
    for i, (w, b) in enumerate(params):
        x = x @ w + b
        if i < n_layers - 1:
            x = jnp.maximum(x, 0.0)
    return x


if __name__ == "__main__":
    key = jax.random.PRNGKey(0)
    layer_sizes = [32, 64, 48, 16]     # arbitrary MLP widths (layer_sizes arg)
    batch = 8

    key, kx = jax.random.split(key)
    x = jax.random.normal(kx, (batch, layer_sizes[0]), jnp.float32)
    params = init_params(layer_sizes, key)

    # Pad + cast ONCE; the padded/bf16 weights live in HBM and are reused.
    padded_params = prepare_params(params)

    out = flexible_relu_network(x, padded_params, out_features=layer_sizes[-1])
    out = jax.block_until_ready(out)

    ref = reference_forward(x, params)
    assert out.shape == (batch, layer_sizes[-1])
    # bf16 MXU inputs (f32 accumulation) => not bit-exact vs. the f32 reference.
    tol = 2e-2 if USE_BF16_MATMUL else 1e-5
    assert jnp.allclose(out, ref, atol=tol, rtol=tol), "mismatch vs JAX reference"

    print("KERNEL_OK")
</pallas_src>

<mosaic_0001>
module attributes {stable_mosaic.version = 11 : i64} {
  func.func @_mlp_fused_kernel(%arg0: i32, %arg1: memref<8x128xbf16, #tpu.memory_space<vmem>>, %arg2: memref<128x128xbf16, #tpu.memory_space<vmem>>, %arg3: memref<1x128xf32, #tpu.memory_space<vmem>>, %arg4: memref<128x128xbf16, #tpu.memory_space<vmem>>, %arg5: memref<1x128xf32, #tpu.memory_space<vmem>>, %arg6: memref<128x128xbf16, #tpu.memory_space<vmem>>, %arg7: memref<1x128xf32, #tpu.memory_space<vmem>>, %arg8: memref<8x128xf32, #tpu.memory_space<vmem>>) attributes {dimension_semantics = [#tpu.dimension_semantics<parallel>], iteration_bounds = array<i64: 1>, scalar_prefetch = 0 : i64, scratch_operands = 0 : i64, tpu.core_type = #tpu.core_type<tc>, window_params = [{transform_indices = @transform_0, window_bounds = array<i64: 8, 128>}, {pipeline_mode = #tpu.pipeline_mode<synchronous>, transform_indices = @transform_1, window_bounds = array<i64: 128, 128>}, {pipeline_mode = #tpu.pipeline_mode<synchronous>, transform_indices = @transform_2, window_bounds = array<i64: 1, 128>}, {pipeline_mode = #tpu.pipeline_mode<synchronous>, transform_indices = @transform_3, window_bounds = array<i64: 128, 128>}, {pipeline_mode = #tpu.pipeline_mode<synchronous>, transform_indices = @transform_4, window_bounds = array<i64: 1, 128>}, {pipeline_mode = #tpu.pipeline_mode<synchronous>, transform_indices = @transform_5, window_bounds = array<i64: 128, 128>}, {pipeline_mode = #tpu.pipeline_mode<synchronous>, transform_indices = @transform_6, window_bounds = array<i64: 1, 128>}, {transform_indices = @transform_7, window_bounds = array<i64: 8, 128>}]} {
    %c0 = arith.constant 0 : index
    %c0_0 = arith.constant 0 : index
    %0 = vector.load %arg1[%c0, %c0_0] : memref<8x128xbf16, #tpu.memory_space<vmem>>, vector<8x128xbf16>
    %c0_1 = arith.constant 0 : index
    %c0_2 = arith.constant 0 : index
    %1 = vector.load %arg2[%c0_1, %c0_2] : memref<128x128xbf16, #tpu.memory_space<vmem>>, vector<128x128xbf16>
    %c0_3 = arith.constant 0 : index
    %c0_4 = arith.constant 0 : index
    %2 = vector.load %arg3[%c0_3, %c0_4] : memref<1x128xf32, #tpu.memory_space<vmem>>, vector<1x128xf32>
    %cst = arith.constant dense<0.000000e+00> : vector<8x128xf32>
    %3 = tpu.matmul %0, %1, %cst {dimension_numbers = #tpu.dot_dimension_numbers<[1], [0], [0], [1], [0, 0, 1, 1], [], []>} : vector<8x128xbf16>, vector<128x128xbf16>, vector<8x128xf32> -> vector<8x128xf32>
    %4 = vector.broadcast %2 : vector<1x128xf32> to vector<8x128xf32>
    %5 = arith.addf %3, %4 : vector<8x128xf32>
    %cst_5 = arith.constant 0.000000e+00 : f32
    %6 = vector.broadcast %cst_5 : f32 to vector<8x128xf32>
    %7 = arith.maximumf %5, %6 : vector<8x128xf32>
    %8 = arith.truncf %7 : vector<8x128xf32> to vector<8x128xbf16>
    %c0_6 = arith.constant 0 : index
    %c0_7 = arith.constant 0 : index
    %9 = vector.load %arg4[%c0_6, %c0_7] : memref<128x128xbf16, #tpu.memory_space<vmem>>, vector<128x128xbf16>
    %c0_8 = arith.constant 0 : index
    %c0_9 = arith.constant 0 : index
    %10 = vector.load %arg5[%c0_8, %c0_9] : memref<1x128xf32, #tpu.memory_space<vmem>>, vector<1x128xf32>
    %cst_10 = arith.constant dense<0.000000e+00> : vector<8x128xf32>
    %11 = tpu.matmul %8, %9, %cst_10 {dimension_numbers = #tpu.dot_dimension_numbers<[1], [0], [0], [1], [0, 0, 1, 1], [], []>} : vector<8x128xbf16>, vector<128x128xbf16>, vector<8x128xf32> -> vector<8x128xf32>
    %12 = vector.broadcast %10 : vector<1x128xf32> to vector<8x128xf32>
    %13 = arith.addf %11, %12 : vector<8x128xf32>
    %cst_11 = arith.constant 0.000000e+00 : f32
    %14 = vector.broadcast %cst_11 : f32 to vector<8x128xf32>
    %15 = arith.maximumf %13, %14 : vector<8x128xf32>
    %16 = arith.truncf %15 : vector<8x128xf32> to vector<8x128xbf16>
    %c0_12 = arith.constant 0 : index
    %c0_13 = arith.constant 0 : index
    %17 = vector.load %arg6[%c0_12, %c0_13] : memref<128x128xbf16, #tpu.memory_space<vmem>>, vector<128x128xbf16>
    %c0_14 = arith.constant 0 : index
    %c0_15 = arith.constant 0 : index
    %18 = vector.load %arg7[%c0_14, %c0_15] : memref<1x128xf32, #tpu.memory_space<vmem>>, vector<1x128xf32>
    %cst_16 = arith.constant dense<0.000000e+00> : vector<8x128xf32>
    %19 = tpu.matmul %16, %17, %cst_16 {dimension_numbers = #tpu.dot_dimension_numbers<[1], [0], [0], [1], [0, 0, 1, 1], [], []>} : vector<8x128xbf16>, vector<128x128xbf16>, vector<8x128xf32> -> vector<8x128xf32>
    %20 = vector.broadcast %18 : vector<1x128xf32> to vector<8x128xf32>
    %21 = arith.addf %19, %20 : vector<8x128xf32>
    %c0_17 = arith.constant 0 : index
    %c0_18 = arith.constant 0 : index
    %22 = vector.load %arg8[%c0_17, %c0_18] : memref<8x128xf32, #tpu.memory_space<vmem>>, vector<8x128xf32>
    tpu.vector_store %arg8[%c0_17, %c0_18], %21 {strides = array<i32>} : memref<8x128xf32, #tpu.memory_space<vmem>>, vector<8x128xf32>,
    return
  }
  func.func @transform_0(%arg0: i32) -> (i32, i32) {
    %c0_i32 = arith.constant 0 : i32
    %c0_i32_0 = arith.constant 0 : i32
    return %arg0, %c0_i32 : i32, i32
  }
  func.func @transform_1(%arg0: i32) -> (i32, i32) {
    %c0_i32 = arith.constant 0 : i32
    %c0_i32_0 = arith.constant 0 : i32
    %c0_i32_1 = arith.constant 0 : i32
    return %c0_i32, %c0_i32_0 : i32, i32
  }
  func.func @transform_2(%arg0: i32) -> (i32, i32) {
    %c0_i32 = arith.constant 0 : i32
    %c0_i32_0 = arith.constant 0 : i32
    %c0_i32_1 = arith.constant 0 : i32
    return %c0_i32, %c0_i32_0 : i32, i32
  }
  func.func @transform_3(%arg0: i32) -> (i32, i32) {
    %c0_i32 = arith.constant 0 : i32
    %c0_i32_0 = arith.constant 0 : i32
    %c0_i32_1 = arith.constant 0 : i32
    return %c0_i32, %c0_i32_0 : i32, i32
  }
  func.func @transform_4(%arg0: i32) -> (i32, i32) {
    %c0_i32 = arith.constant 0 : i32
    %c0_i32_0 = arith.constant 0 : i32
    %c0_i32_1 = arith.constant 0 : i32
    return %c0_i32, %c0_i32_0 : i32, i32
  }
  func.func @transform_5(%arg0: i32) -> (i32, i32) {
    %c0_i32 = arith.constant 0 : i32
    %c0_i32_0 = arith.constant 0 : i32
    %c0_i32_1 = arith.constant 0 : i32
    return %c0_i32, %c0_i32_0 : i32, i32
  }
  func.func @transform_6(%arg0: i32) -> (i32, i32) {
    %c0_i32 = arith.constant 0 : i32
    %c0_i32_0 = arith.constant 0 : i32
    %c0_i32_1 = arith.constant 0 : i32
    return %c0_i32, %c0_i32_0 : i32, i32
  }
  func.func @transform_7(%arg0: i32) -> (i32, i32) {
    %c0_i32 = arith.constant 0 : i32
    %c0_i32_0 = arith.constant 0 : i32
    return %arg0, %c0_i32 : i32, i32
  }
}

</mosaic_0001>

<bundles_post_ra>
// kernel: flexible_relu_network.1
= control target key start
LH: loop header
LB: loop body
LE: loop exit
PB: predicated region body
PF: predicated region fallthrough
CT: control target
= control target key end

     0   :  { %12 = vsyncpa [#allocation3], 0  ;;  %s642_s0 = inlined_call_operand.vmem [shape: bf16[8,128], index: 0, kind: input, shape index: {}]   ;;  %s643_s1 = inlined_call_operand.hbm [shape: bf16[128,128], index: 1, kind: input, shape index: {}]   ;;  %s644_s2 = inlined_call_operand.vmem [shape: f32[1,128], index: 2, kind: input, shape index: {}]   ;;  %s645_s3 = inlined_call_operand.hbm [shape: bf16[128,128], index: 3, kind: input, shape index: {}]   ;;  %s646_s4 = inlined_call_operand.vmem [shape: f32[1,128], index: 4, kind: input, shape index: {}]   ;;  %s647_s5 = inlined_call_operand.hbm [shape: bf16[128,128], index: 5, kind: input, shape index: {}]   ;;  %s648_s6 = inlined_call_operand.vmem [shape: f32[1,128], index: 6, kind: input, shape index: {}]   ;;  %s649_s7 = inlined_call_operand.hbm [shape: f32[8,128], index: 7, kind: output, shape index: {}]  }
   0x1   :  { %13 = vsyncpa [#allocation6], 0 }
   0x2   :  { %14 = vsyncpa [#allocation4], 0  ;;  %s36_s26 = sshll.u32 %s645_s3, 4  ;;  %s572_s27 = smov [#allocation5]   ;;  %s37_s26 = int_to_ptr.hbm [resolvable:$true] %s36_s26 }
   0x3   :  { %s38_s28 = sshll.u32 %s572_s27, 4  ;;  %s21_s8 = sshll.u32 %s643_s1, 4  ;;  %s39_s28 = int_to_ptr.vmem [resolvable:$true] %s38_s28  ;;  %s22_s8 = int_to_ptr.hbm [resolvable:$true] %s21_s8 }
   0x4   :  { %s573_s9 = smov 64   ;;  %s574_s10 = smov 4  }
   0x5   :  { %44 = dma.hbm_to_vmem [thread:$0]  %s37_s26, 1024, %s39_s28, [#allocation6], %s573_s9, %s573_s9, %s574_s10  }
   0x6   :  { %s575_s11 = smov [#allocation2]   ;;  %s51_s15 = sshll.u32 %s647_s5, 4  ;;  %s52_s15 = int_to_ptr.hbm [resolvable:$true] %s51_s15 }
   0x7   :  { %s23_s12 = sshll.u32 %s575_s11, 4  ;;  %s576_s3 = smov [#allocation7]   ;;  %s24_s12 = int_to_ptr.vmem [resolvable:$true] %s23_s12 }
   0x8   :  { %29 = dma.hbm_to_vmem [thread:$0]  %s22_s8, 1024, %s24_s12, [#allocation3], %s573_s9, %s573_s9, %s574_s10  }
   0x9   :  { %s53_s16 = sshll.u32 %s576_s3, 4  ;;  %s54_s16 = int_to_ptr.vmem [resolvable:$true] %s53_s16 }
   0xa   :  { %59 = dma.hbm_to_vmem [thread:$0]  %s52_s15, 1024, %s54_s16, [#allocation6], %s573_s9, %s573_s9, %s574_s10  }
   0xb   :  { %566 = dma.done.wait [#allocation3], 1024  }
   0xc   :  { %567 = vsyncadd [#allocation3], 4294966272 }
   0xd   :  { %568 = dma.done.wait [#allocation6], 2048  }
   0xe   :  { %569 = vsyncadd [#allocation6], 4294965248  ;;  %v444_v0 = vld [vmem:[#allocation2 + $0x38] sm:$0xff]  ;;  %v443_v1 = vld [vmem:[#allocation2 + $0x30] sm:$0xff]  ;;  %s577_s21 = smov [#allocation8]   ;;  %s330_s25 = sshll.u32 %s649_s7, 4  ;;  %s331_s25 = int_to_ptr.hbm [resolvable:$true] %s330_s25 }
   0xf   :  { %143 = vmatpush.bf16.msra.mxu0 %v444_v0  ;;  %v452_v2 = vld [vmem:[#allocation5 + $0x38] sm:$0xff]  ;;  %v451_v3 = vld [vmem:[#allocation5 + $0x30] sm:$0xff]  ;;  %v442_v4 = vld [vmem:[#allocation2 + $0x28] sm:$0xff]  ;;  %s328_s22 = sshll.u32 %s577_s21, 4  ;;  %s329_s22 = int_to_ptr.vmem [resolvable:$true] %s328_s22 }
  0x10   :  { %226 = vmatpush.bf16.msra.mxu1 %v452_v2  ;;  %v450_v5 = vld [vmem:[#allocation5 + $0x28] sm:$0xff]  ;;  %v441_v6 = vld [vmem:[#allocation2 + $0x20] sm:$0xff]  ;;  %v440_v8 = vld [vmem:[#allocation2 + $0x18] sm:$0xff] }
  0x11   :  { %v449_v7 = vld [vmem:[#allocation5 + $0x20] sm:$0xff]  ;;  %v448_v9 = vld [vmem:[#allocation5 + $0x18] sm:$0xff]  ;;  %v439_v10 = vld [vmem:[#allocation2 + $0x10] sm:$0xff] }
  0x12   :  { %v447_v11 = vld [vmem:[#allocation5 + $0x10] sm:$0xff]  ;;  %v438_v12 = vld [vmem:[#allocation2 + $0x8] sm:$0xff]  ;;  %v437_v13 = vld [vmem:[#allocation2] sm:$0xff] }
  0x13   :  { %144 = vmatpush.bf16.msra.mxu0 %v443_v1  ;;  %v74_v14 = vld [vmem:[%s642_s0] sm:$0xf]  ;;  %v446_v15 = vld [vmem:[#allocation5 + $0x8] sm:$0xff]  ;;  %v460_v17 = vld [vmem:[#allocation7 + $0x38] sm:$0xff] }
  0x14   :  { %227 = vmatpush.bf16.msra.mxu1 %v451_v3  ;;  %v445_v16 = vld [vmem:[#allocation5] sm:$0xff]  ;;  %309 = vmatpush.bf16.msra.mxu2 %v460_v17  ;;  %v459_v18 = vld [vmem:[#allocation7 + $0x30] sm:$0xff]  ;;  %v458_v19 = vld [vmem:[#allocation7 + $0x28] sm:$0xff] }
  0x15   :  { %v457_v20 = vld [vmem:[#allocation7 + $0x20] sm:$0xff]  ;;  %v456_v21 = vld [vmem:[#allocation7 + $0x18] sm:$0xff]  ;;  %v455_v22 = vld [vmem:[#allocation7 + $0x10] sm:$0xff] }
  0x16   :  { %v467_v23 = vld [vmem:[%s644_s2] ss:$0 sm:$0xff]  ;;  %v454_v29 = vld [vmem:[#allocation7 + $0x8] sm:$0xff] }
  0x17   :  { %145 = vmatpush.bf16.msra.mxu0 %v442_v4  ;;  %v453_v30 = vld [vmem:[#allocation7] sm:$0xff] }
  0x18   :  { %228 = vmatpush.bf16.msra.mxu1 %v450_v5  ;;  %310 = vmatpush.bf16.msra.mxu2 %v459_v18  ;;  %v468_v31 = vld [vmem:[%s646_s4] ss:$0 sm:$0xff] }
  0x19   :  { %v469_v37 = vld [vmem:[%s648_s6] ss:$0 sm:$0xff] }
  0x1b   :  { %146 = vmatpush.bf16.msra.mxu0 %v441_v6 }
  0x1c   :  { %229 = vmatpush.bf16.msra.mxu1 %v449_v7  ;;  %311 = vmatpush.bf16.msra.mxu2 %v458_v19 }
  0x1f   :  { %147 = vmatpush.bf16.msra.mxu0 %v440_v8 }
  0x20   :  { %230 = vmatpush.bf16.msra.mxu1 %v448_v9  ;;  %312 = vmatpush.bf16.msra.mxu2 %v457_v20 }
  0x23   :  { %148 = vmatpush.bf16.msra.mxu0 %v439_v10 }
  0x24   :  { %231 = vmatpush.bf16.msra.mxu1 %v447_v11  ;;  %313 = vmatpush.bf16.msra.mxu2 %v456_v21 }
  0x27   :  { %149 = vmatpush.bf16.msra.mxu0 %v438_v12 }
  0x28   :  { %232 = vmatpush.bf16.msra.mxu1 %v446_v15  ;;  %314 = vmatpush.bf16.msra.mxu2 %v455_v22 }
  0x2b   :  { %150 = vmatpush.bf16.msra.mxu0 %v437_v13 }
  0x2c   :  { %233 = vmatpush.bf16.msra.mxu1 %v445_v16  ;;  %315 = vmatpush.bf16.msra.mxu2 %v454_v29 }
  0x2e   :  { %151 = vmatmul.bf16.vlgmr.msra.gmra.mxu0 %v74_v14 }
  0x30   :  { %316 = vmatpush.bf16.msra.mxu2 %v453_v30 }
  0xab   :  { %v152_v24 = vpop.f32.mrf.mxu0 }
  0xac   :  { %v153_v25 = vadd.f32 %v467_v23, %v152_v24 }
  0xae   :  { %v156_v26 = vmax.f32 %v153_v25, 0.0 }
  0xb0   :  { %v157_v27 = vpack.c.bf16 %v156_v26, %v156_v26 }
  0xb2   :  { %234 = vmatmul.bf16.vlgmr.msra.gmra.mxu1 %v157_v27 }
  0xb3   :  { %v154_v28 = vpop.f32.mrf.mxu0 }
 0x12f   :  { %v235_v32 = vpop.f32.mrf.mxu1 }
 0x130   :  { %v236_v33 = vadd.f32 %v468_v31, %v235_v32 }
 0x132   :  { %v239_v34 = vmax.f32 %v236_v33, 0.0 }
 0x134   :  { %v240_v35 = vpack.c.bf16 %v239_v34, %v239_v34 }
 0x136   :  { %317 = vmatmul.bf16.vlgmr.msra.gmra.mxu2 %v240_v35 }
 0x137   :  { %v237_v36 = vpop.f32.mrf.mxu1 }
 0x1b9   :  { %v318_v38 = vpop.f32.mrf.mxu2 }
 0x1ba   :  { %v319_v39 = vadd.f32 %v469_v37, %v318_v38 }
 0x1bc   :  { %322 = vst [vmem:[#allocation8] sm:$0xff] %v319_v39 }
 0x1bd   :  { %333 = dma.vmem_to_hbm [thread:$0]  %s329_s22, 128, %s331_s25, [#allocation4]  }
 0x1c1   :  { %v320_v40 = vpop.f32.mrf.mxu2 }
 0x1c2   :  { %570 = dma.done.wait [#allocation4], 128  }
 0x1c3   :  { %571 = vsyncadd [#allocation4], 4294967168 }
 0x1c4   :  { %338 = vsyncpa [#allocation3], 1 }
 0x1c5   :  { %339 = vsyncpa [#allocation6], 1 }
 0x1c6   :  { %340 = vsyncpa [#allocation4], 1 }

</bundles_post_ra>
